<compile_context>
chip_gen: v6e
topology: v6e:2x2x1
jax: 0.10.0
libtpu: 0.0.40
codegen_flags: <defaults>
</compile_context>

<pallas_src>
import jax
import jax.numpy as jnp
from jax.experimental import pallas as pl
from jax.experimental.pallas import tpu as pltpu


def full3net_kernel(xT_ref, w1_ref, b1_ref, w2_ref, b2_ref,
                    w3_ref, b3_ref, w4_ref, b4_ref, o_ref):
    xT = xT_ref[...]                      # (2, block_n)   batch on lanes, f32
    w1 = w1_ref[...]                      # (hid, 2)       f32

    # Layer 1: K=2 contraction as two VPU broadcast FMAs (keeps the MXU free
    # and avoids padding a depth-2 contraction to the full systolic depth).
    z1 = w1[:, 0:1] * xT[0:1, :] + w1[:, 1:2] * xT[1:2, :] + b1_ref[...]
    h1 = jnp.tanh(z1)                     # (hid, block_n) f32

    # Layers 2-4: lane-dense MXU matmuls.  Activations are cast to the weight
    # dtype (bf16 default -> one MXU pass; f32 weights -> exact path).  The
    # accumulation is always f32 via preferred_element_type.
    mxu_dt = w2_ref.dtype
    h2 = jnp.tanh(jnp.dot(w2_ref[...], h1.astype(mxu_dt),
                          preferred_element_type=jnp.float32) + b2_ref[...])
    h3 = jnp.tanh(jnp.dot(w3_ref[...], h2.astype(mxu_dt),
                          preferred_element_type=jnp.float32) + b3_ref[...])
    z = jnp.dot(w4_ref[...], h3.astype(mxu_dt),
                preferred_element_type=jnp.float32) + b4_ref[...]
    o_ref[...] = jax.nn.sigmoid(z)        # (1, block_n) unmasked lane-dense store


def _choose_block_n(n, hid, block_n):
    """Clamp block_n (multiple of 128) for VMEM safety and megacore use."""
    block_n = max(128, (block_n // 128) * 128)
    # (a) VMEM: double-buffered x/out tiles + f32 intermediates must fit the
    #     tightest default scoped-VMEM across generations (v7x has 64 MiB
    #     physical / 32 MiB scoped; v5e default scope is 16 MiB) -> ~12 MiB.
    per_lane_bytes = 4 * (3 * hid + 8)
    vmem_cap = max(128, ((12 << 20) // per_lane_bytes // 128) * 128)
    block_n = min(block_n, vmem_cap)
    # (b) Megacore: keep >= 2 grid steps when the batch allows it so v7x's two
    #     TensorCores both get work (costs ~0.35us extra on 1-TC v5e/v6e).
    if n > 128:
        block_n = min(block_n, max(128, pl.cdiv(pl.cdiv(n, 2), 128) * 128))
    # (c) Never tile wider than the (128-aligned) batch.
    block_n = min(block_n, max(128, pl.cdiv(n, 128) * 128))
    return block_n


def full3net_forward_lanes(xT, params, *, block_n=2048, use_bf16_mxu=True):
    """Core entry point.  xT: (2, N) float32 with the batch on the minor axis.

    No wrapper pad / transpose: xT streams straight into the kernel and the
    (possibly partial) last block is handled by Pallas.  Returns (N, 1)."""
    assert xT.shape[0] == 2, "expected (2, N) input (batch on lanes)"
    n = int(xT.shape[1])
    hid = int(params["w2"].shape[0])
    block_n = _choose_block_n(n, hid, block_n)

    w1, b1 = params["w1"], params["b1"]
    w2, b2 = params["w2"], params["b2"]
    w3, b3 = params["w3"], params["b3"]
    w4, b4 = params["w4"], params["b4"]
    if use_bf16_mxu:
        # One-time HBM-side cast: resident MXU weights become bf16 (single
        # systolic pass, half the resident VMEM).  Biases / VPU math stay f32.
        w2 = w2.astype(jnp.bfloat16)
        w3 = w3.astype(jnp.bfloat16)
        w4 = w4.astype(jnp.bfloat16)

    def resident(arr):
        # Full-array block with a grid-invariant index_map: DMA'd once, lives
        # in VMEM for the whole kernel (no re-DMA per grid step).
        return pl.BlockSpec(arr.shape, lambda i: (0, 0))

    param_bytes = sum(int(p.size) * p.dtype.itemsize
                      for p in (w1, b1, w2, b2, w3, b3, w4, b4))
    cost = pl.CostEstimate(
        flops=2 * n * (2 * hid + 2 * hid * hid + hid),
        transcendentals=n * (3 * hid + 1),
        bytes_accessed=12 * n + param_bytes,
    )

    out = pl.pallas_call(
        full3net_kernel,
        out_shape=jax.ShapeDtypeStruct((1, n), jnp.float32),
        grid=(pl.cdiv(n, block_n),),
        in_specs=[
            pl.BlockSpec((2, block_n), lambda i: (0, i)),   # x streams
            resident(w1), resident(b1),
            resident(w2), resident(b2),
            resident(w3), resident(b3),
            resident(w4), resident(b4),
        ],
        out_specs=pl.BlockSpec((1, block_n), lambda i: (0, i)),
        compiler_params=pltpu.CompilerParams(
            dimension_semantics=("parallel",)),
        cost_estimate=cost,
    )(xT, w1, b1, w2, b2, w3, b3, w4, b4)

    return out.reshape(n, 1)


def full3net_forward(x, params, *, block_n=2048, use_bf16_mxu=True):
    """PyTorch-interface wrapper: x is (N, 2), returns (N, 1).

    The x.T here is the single extra HBM pass the lanes entry avoids; prefer
    producing (2, N) upstream and calling full3net_forward_lanes directly."""
    return full3net_forward_lanes(x.T, params, block_n=block_n,
                                  use_bf16_mxu=use_bf16_mxu)


def init_params(key, hid):
    """Mimics torch.nn.Linear init: U(-1/sqrt(fan_in), +1/sqrt(fan_in)).
    Weights stored as (out_features, in_features); biases as (out_features, 1)."""
    dims = [(2, hid), (hid, hid), (hid, hid), (hid, 1)]
    params = {}
    keys = jax.random.split(key, 2 * len(dims))
    for i, (fan_in, fan_out) in enumerate(dims):
        bound = 1.0 / (fan_in ** 0.5)
        w = jax.random.uniform(keys[2 * i], (fan_out, fan_in),
                               minval=-bound, maxval=bound, dtype=jnp.float32)
        b = jax.random.uniform(keys[2 * i + 1], (fan_out, 1),
                               minval=-bound, maxval=bound, dtype=jnp.float32)
        params[f"w{i + 1}"] = w
        params[f"b{i + 1}"] = b
    return params


def reference_forward(x, params):
    """Plain-JAX reference of the same forward pass (batch-major layout)."""
    h1 = jnp.tanh(x @ params["w1"].T + params["b1"].T)
    h2 = jnp.tanh(h1 @ params["w2"].T + params["b2"].T)
    h3 = jnp.tanh(h2 @ params["w3"].T + params["b3"].T)
    return jax.nn.sigmoid(h3 @ params["w4"].T + params["b4"].T)


if __name__ == "__main__":
    key = jax.random.PRNGKey(0)
    k_params, k_x = jax.random.split(key)

    hid = 32
    batch = 300          # not a multiple of 128 -> exercises the partial tail block

    params = init_params(k_params, hid)
    x = jax.random.normal(k_x, (batch, 2), dtype=jnp.float32)
    ref = reference_forward(x, params)

    # Exact-parity path: f32 MXU operands, small block -> multi-step grid plus
    # a non-divisible (partial) last block, no wrapper pad.
    out_f32 = full3net_forward(x, params, block_n=256, use_bf16_mxu=False)
    out_f32 = jax.block_until_ready(out_f32)
    assert out_f32.shape == (batch, 1)
    assert jnp.allclose(out_f32, ref, atol=1e-5, rtol=1e-5)

    # Performance path: (2, N) input straight from "upstream" (no hot-path
    # transpose/pad), default block_n policy, bf16 MXU operands -> looser
    # tolerance (bf16 operand rounding; accumulation stays f32).
    out_fast = full3net_forward_lanes(x.T, params)
    out_fast = jax.block_until_ready(out_fast)
    assert out_fast.shape == (batch, 1)
    assert jnp.allclose(out_fast, ref, atol=2e-2, rtol=2e-2)

    print("KERNEL_OK")
</pallas_src>

<mosaic_0001>
module attributes {stable_mosaic.version = 11 : i64} {
  func.func @full3net_kernel(%arg0: i32, %arg1: memref<2x256xf32, #tpu.memory_space<vmem>>, %arg2: memref<32x2xf32, #tpu.memory_space<vmem>>, %arg3: memref<32x1xf32, #tpu.memory_space<vmem>>, %arg4: memref<32x32xf32, #tpu.memory_space<vmem>>, %arg5: memref<32x1xf32, #tpu.memory_space<vmem>>, %arg6: memref<32x32xf32, #tpu.memory_space<vmem>>, %arg7: memref<32x1xf32, #tpu.memory_space<vmem>>, %arg8: memref<1x32xf32, #tpu.memory_space<vmem>>, %arg9: memref<1x1xf32, #tpu.memory_space<vmem>>, %arg10: memref<1x256xf32, #tpu.memory_space<vmem>>) attributes {dimension_semantics = [#tpu.dimension_semantics<parallel>], iteration_bounds = array<i64: 2>, scalar_prefetch = 0 : i64, scratch_operands = 0 : i64, tpu.core_type = #tpu.core_type<tc>, window_params = [{transform_indices = @transform_0, window_bounds = array<i64: 2, 256>}, {pipeline_mode = #tpu.pipeline_mode<synchronous>, transform_indices = @transform_1, window_bounds = array<i64: 32, 2>}, {pipeline_mode = #tpu.pipeline_mode<synchronous>, transform_indices = @transform_2, window_bounds = array<i64: 32, 1>}, {pipeline_mode = #tpu.pipeline_mode<synchronous>, transform_indices = @transform_3, window_bounds = array<i64: 32, 32>}, {pipeline_mode = #tpu.pipeline_mode<synchronous>, transform_indices = @transform_4, window_bounds = array<i64: 32, 1>}, {pipeline_mode = #tpu.pipeline_mode<synchronous>, transform_indices = @transform_5, window_bounds = array<i64: 32, 32>}, {pipeline_mode = #tpu.pipeline_mode<synchronous>, transform_indices = @transform_6, window_bounds = array<i64: 32, 1>}, {pipeline_mode = #tpu.pipeline_mode<synchronous>, transform_indices = @transform_7, window_bounds = array<i64: 1, 32>}, {pipeline_mode = #tpu.pipeline_mode<synchronous>, transform_indices = @transform_8, window_bounds = array<i64: 1, 1>}, {transform_indices = @transform_9, window_bounds = array<i64: 1, 256>}]} {
    %c0 = arith.constant 0 : index
    %c0_0 = arith.constant 0 : index
    %0 = vector.load %arg1[%c0, %c0_0] : memref<2x256xf32, #tpu.memory_space<vmem>>, vector<2x256xf32>
    %c0_1 = arith.constant 0 : index
    %c0_2 = arith.constant 0 : index
    %1 = vector.load %arg2[%c0_1, %c0_2] : memref<32x2xf32, #tpu.memory_space<vmem>>, vector<32x2xf32>
    %2 = vector.extract_strided_slice %1 {offsets = [0, 0], sizes = [32, 1], strides = [1, 1]} : vector<32x2xf32> to vector<32x1xf32>
    %3 = vector.extract_strided_slice %0 {offsets = [0, 0], sizes = [1, 256], strides = [1, 1]} : vector<2x256xf32> to vector<1x256xf32>
    %4 = vector.broadcast %2 : vector<32x1xf32> to vector<32x256xf32>
    %5 = vector.broadcast %3 : vector<1x256xf32> to vector<32x256xf32>
    %6 = arith.mulf %4, %5 : vector<32x256xf32>
    %7 = vector.extract_strided_slice %1 {offsets = [0, 1], sizes = [32, 1], strides = [1, 1]} : vector<32x2xf32> to vector<32x1xf32>
    %8 = vector.extract_strided_slice %0 {offsets = [1, 0], sizes = [1, 256], strides = [1, 1]} : vector<2x256xf32> to vector<1x256xf32>
    %9 = vector.broadcast %7 : vector<32x1xf32> to vector<32x256xf32>
    %10 = vector.broadcast %8 : vector<1x256xf32> to vector<32x256xf32>
    %11 = arith.mulf %9, %10 : vector<32x256xf32>
    %12 = arith.addf %6, %11 : vector<32x256xf32>
    %c0_3 = arith.constant 0 : index
    %c0_4 = arith.constant 0 : index
    %13 = vector.load %arg3[%c0_3, %c0_4] : memref<32x1xf32, #tpu.memory_space<vmem>>, vector<32x1xf32>
    %14 = vector.broadcast %13 : vector<32x1xf32> to vector<32x256xf32>
    %15 = arith.addf %12, %14 : vector<32x256xf32>
    %16 = math.tanh %15 : vector<32x256xf32>
    %c0_5 = arith.constant 0 : index
    %c0_6 = arith.constant 0 : index
    %17 = vector.load %arg4[%c0_5, %c0_6] : memref<32x32xf32, #tpu.memory_space<vmem>>, vector<32x32xf32>
    %cst = arith.constant dense<0.000000e+00> : vector<32x256xf32>
    %18 = tpu.matmul %17, %16, %cst {dimension_numbers = #tpu.dot_dimension_numbers<[1], [0], [0], [1], [0, 0, 1, 1], [], []>} : vector<32x32xf32>, vector<32x256xf32>, vector<32x256xf32> -> vector<32x256xf32>
    %c0_7 = arith.constant 0 : index
    %c0_8 = arith.constant 0 : index
    %19 = vector.load %arg5[%c0_7, %c0_8] : memref<32x1xf32, #tpu.memory_space<vmem>>, vector<32x1xf32>
    %20 = vector.broadcast %19 : vector<32x1xf32> to vector<32x256xf32>
    %21 = arith.addf %18, %20 : vector<32x256xf32>
    %22 = math.tanh %21 : vector<32x256xf32>
    %c0_9 = arith.constant 0 : index
    %c0_10 = arith.constant 0 : index
    %23 = vector.load %arg6[%c0_9, %c0_10] : memref<32x32xf32, #tpu.memory_space<vmem>>, vector<32x32xf32>
    %cst_11 = arith.constant dense<0.000000e+00> : vector<32x256xf32>
    %24 = tpu.matmul %23, %22, %cst_11 {dimension_numbers = #tpu.dot_dimension_numbers<[1], [0], [0], [1], [0, 0, 1, 1], [], []>} : vector<32x32xf32>, vector<32x256xf32>, vector<32x256xf32> -> vector<32x256xf32>
    %c0_12 = arith.constant 0 : index
    %c0_13 = arith.constant 0 : index
    %25 = vector.load %arg7[%c0_12, %c0_13] : memref<32x1xf32, #tpu.memory_space<vmem>>, vector<32x1xf32>
    %26 = vector.broadcast %25 : vector<32x1xf32> to vector<32x256xf32>
    %27 = arith.addf %24, %26 : vector<32x256xf32>
    %28 = math.tanh %27 : vector<32x256xf32>
    %c0_14 = arith.constant 0 : index
    %c0_15 = arith.constant 0 : index
    %29 = vector.load %arg8[%c0_14, %c0_15] : memref<1x32xf32, #tpu.memory_space<vmem>>, vector<1x32xf32>
    %cst_16 = arith.constant dense<0.000000e+00> : vector<1x256xf32>
    %30 = tpu.matmul %29, %28, %cst_16 {dimension_numbers = #tpu.dot_dimension_numbers<[1], [0], [0], [1], [0, 0, 1, 1], [], []>} : vector<1x32xf32>, vector<32x256xf32>, vector<1x256xf32> -> vector<1x256xf32>
    %c0_17 = arith.constant 0 : index
    %c0_18 = arith.constant 0 : index
    %31 = vector.load %arg9[%c0_17, %c0_18] : memref<1x1xf32, #tpu.memory_space<vmem>>, vector<1x1xf32>
    %32 = vector.broadcast %31 : vector<1x1xf32> to vector<1x256xf32>
    %33 = arith.addf %30, %32 : vector<1x256xf32>
    %34 = arith.negf %33 : vector<1x256xf32>
    %35 = math.exp %34 : vector<1x256xf32>
    %cst_19 = arith.constant 1.000000e+00 : f32
    %36 = vector.broadcast %cst_19 : f32 to vector<1x256xf32>
    %37 = arith.addf %36, %35 : vector<1x256xf32>
    %38 = arith.divf %36, %37 : vector<1x256xf32>
    %c0_20 = arith.constant 0 : index
    %c0_21 = arith.constant 0 : index
    %39 = vector.load %arg10[%c0_20, %c0_21] : memref<1x256xf32, #tpu.memory_space<vmem>>, vector<1x256xf32>
    tpu.vector_store %arg10[%c0_20, %c0_21], %38 {strides = array<i32>} : memref<1x256xf32, #tpu.memory_space<vmem>>, vector<1x256xf32>,
    return
  }
  func.func @transform_0(%arg0: i32) -> (i32, i32) {
    %c0_i32 = arith.constant 0 : i32
    %c0_i32_0 = arith.constant 0 : i32
    return %c0_i32, %arg0 : i32, i32
  }
  func.func @transform_1(%arg0: i32) -> (i32, i32) {
    %c0_i32 = arith.constant 0 : i32
    %c0_i32_0 = arith.constant 0 : i32
    %c0_i32_1 = arith.constant 0 : i32
    return %c0_i32, %c0_i32_0 : i32, i32
  }
  func.func @transform_2(%arg0: i32) -> (i32, i32) {
    %c0_i32 = arith.constant 0 : i32
    %c0_i32_0 = arith.constant 0 : i32
    %c0_i32_1 = arith.constant 0 : i32
    return %c0_i32, %c0_i32_0 : i32, i32
  }
  func.func @transform_3(%arg0: i32) -> (i32, i32) {
    %c0_i32 = arith.constant 0 : i32
    %c0_i32_0 = arith.constant 0 : i32
    %c0_i32_1 = arith.constant 0 : i32
    return %c0_i32, %c0_i32_0 : i32, i32
  }
  func.func @transform_4(%arg0: i32) -> (i32, i32) {
    %c0_i32 = arith.constant 0 : i32
    %c0_i32_0 = arith.constant 0 : i32
    %c0_i32_1 = arith.constant 0 : i32
    return %c0_i32, %c0_i32_0 : i32, i32
  }
  func.func @transform_5(%arg0: i32) -> (i32, i32) {
    %c0_i32 = arith.constant 0 : i32
    %c0_i32_0 = arith.constant 0 : i32
    %c0_i32_1 = arith.constant 0 : i32
    return %c0_i32, %c0_i32_0 : i32, i32
  }
  func.func @transform_6(%arg0: i32) -> (i32, i32) {
    %c0_i32 = arith.constant 0 : i32
    %c0_i32_0 = arith.constant 0 : i32
    %c0_i32_1 = arith.constant 0 : i32
    return %c0_i32, %c0_i32_0 : i32, i32
  }
  func.func @transform_7(%arg0: i32) -> (i32, i32) {
    %c0_i32 = arith.constant 0 : i32
    %c0_i32_0 = arith.constant 0 : i32
    %c0_i32_1 = arith.constant 0 : i32
    return %c0_i32, %c0_i32_0 : i32, i32
  }
  func.func @transform_8(%arg0: i32) -> (i32, i32) {
    %c0_i32 = arith.constant 0 : i32
    %c0_i32_0 = arith.constant 0 : i32
    %c0_i32_1 = arith.constant 0 : i32
    return %c0_i32, %c0_i32_0 : i32, i32
  }
  func.func @transform_9(%arg0: i32) -> (i32, i32) {
    %c0_i32 = arith.constant 0 : i32
    %c0_i32_0 = arith.constant 0 : i32
    return %c0_i32, %arg0 : i32, i32
  }
}

</mosaic_0001>

<bundles_post_ra>
// kernel: tpu_custom_call.1
= control target key start
LH: loop header
LB: loop body
LE: loop exit
PB: predicated region body
PF: predicated region fallthrough
CT: control target
= control target key end

     0   :  { %s1443_s0 = inlined_call_operand.vmem [shape: f32[2,300], index: 0, kind: input, shape index: {}]   ;;  %s1444_s1 = inlined_call_operand.vmem [shape: f32[32,2], index: 1, kind: input, shape index: {}]   ;;  %s1445_s2 = inlined_call_operand.vmem [shape: f32[32,1], index: 2, kind: input, shape index: {}]   ;;  %s1446_s3 = inlined_call_operand.vmem [shape: f32[32,32], index: 3, kind: input, shape index: {}]   ;;  %s1447_s4 = inlined_call_operand.vmem [shape: f32[32,1], index: 4, kind: input, shape index: {}]   ;;  %s1448_s5 = inlined_call_operand.vmem [shape: f32[32,32], index: 5, kind: input, shape index: {}]   ;;  %s1449_s6 = inlined_call_operand.vmem [shape: f32[32,1], index: 6, kind: input, shape index: {}]   ;;  %s1450_s7 = inlined_call_operand.vmem [shape: f32[1,32], index: 7, kind: input, shape index: {}]   ;;  %s1451_s8 = inlined_call_operand.<no memory space> [shape: f32[1,1], index: 8, kind: input, shape index: {}]   ;;  %s1452_s9 = inlined_call_operand.hbm [shape: f32[1,300], index: 9, kind: output, shape index: {}]  }
   0x1   :  { %v14_v0 = vstv %s1451_s8 }
   0x2   :  { %15 = vst [vmem:[#allocation2] sm:$0x1] %v14_v0 }
   0x3   :  { %16 = vsyncpa [#allocation4], 0 }
   0x4   :  { %18 = vsyncpa [#allocation4 + $0x1], 0  ;;  %s1227_s11 = smov 0   ;;  %s1229_s12 = smov 0  }
   0x5   :  { %s1231_s13 = smov 0   ;;  %s1233_s14 = smov 0  }
   0x6 LB: > { %s1248_s8 = sadd.s32 4294967295, %s1167_s14   ;;  %s976_s15 = sadd.s32 4294967294, %s1167_s14   ;;  %s1167_s14 = sphi %s1233_s14, %s1458_s14   ;;  %s1163_s13 = sphi %s1231_s13, %s1457_s13   ;;  %s1159_s12 = sphi %s1229_s12, %s1456_s12   ;;  %s1155_s11 = sphi %s1227_s11, %s1455_s11  }
   0x7   : > { %s1252_s16 = sadd.s32 1, %s1167_s14   ;;  %s225_s17 = sadd.s32 1, %s1163_s13 }
   0x8   : > { %s222_s18 = ssub.s32 %s1167_s14, %s1252_s16  ;;  %p235_p0 = scmp.ne.s32.totalorder %s1163_s13, %s1159_s12 }
   0x9   : > { %p223_p1 = scmp.eq.s32.totalorder %s222_s18, 0  ;;  %p236_p2 = scmp.eq.s32.totalorder %s1248_s8, 1 }
   0xa   : > { %p241_p3 = scmp.ne.s32.totalorder %s1159_s12, %s1155_s11  ;;  %p242_p4 = scmp.eq.s32.totalorder %s976_s15, 1 }
   0xb   : > { %s1263_s19 = scalar_select %p223_p1, %s1163_s13, %s225_s17  }
   0xc   : > { %p1265_p5 = por %p236_p2, %p235_p0  ;;  %p1269_p6 = por %p242_p4, %p241_p3 }
   0xd   : > { %p979_p7 = scmp.ge.s32.totalorder %s1167_s14, 1  ;;  %p301_p8 = scmp.lt.s32.totalorder %s1167_s14, 3 }
   0xf   : > { %p302_p9 = pnand %p979_p7, %p301_p8 }
  0x10   : > { %s1326_s28 = sshll.u32 (!%p302_p9), %s1248_s8, 1  ;;  %s338_s27 = sand.u32 (!%p302_p9), 1, %s1159_s12  }
  0x11   : > { %305 = sbr.rel (%p302_p9) target bundleno = 919 (0x397), region = 56  ;;  %p346_p10 = scmp.lt.s32.totalorder (!%p302_p9), %s1326_s28, 2 }
  0x12   : > { %s1396_s10 = scalar_lea.sflag (!%p302_p9), [#allocation4], %s338_s27 }
  0x16   : > { %v364_v1 = vld [vmem:[%s1444_s1 + $0x18] sm:$0xff]  ;;  %v363_v2 = vld [vmem:[%s1444_s1 + $0x10] sm:$0xff]  ;;  %v1169_v3 = vmov 1   ;;  %v1170_v4 = vmov 0   ;;  %v362_v5 = vld [vmem:[%s1444_s1 + $0x8] sm:$0xff]  ;;  %v1171_v20 = vmov 0.0   ;;  %v386_v21 = vlaneseq }
  0x17   : > { %1044 = vset.pattern.permute.xlu0 %v1169_v3  ;;  %1045 = vset.pattern.permute.xlu1 %v1170_v4  ;;  %v361_v6 = vld [vmem:[%s1444_s1] sm:$0xff]  ;;  %v465_v7 = vld [vmem:[%s1445_s2 + $0x18] sm:$0xff]  ;;  %v463_v8 = vld [vmem:[%s1445_s2 + $0x8] sm:$0xff]  ;;  %s347_s29 = scalar_select %p346_p10, %s1326_s28, 2  ;;  %vm530_vm0 = vcmask 261120  }
  0x18   : > { %425 = vperm.xlu0 %1044, %v364_v1   ;;  %377 = vperm.xlu1 %1045, %v363_v2   ;;  %v509_v9 = vld [vmem:[%s1447_s4 + $0x18] sm:$0xff]  ;;  %v464_v10 = vld [vmem:[%s1445_s2 + $0x10] sm:$0xff]  ;;  %v507_v11 = vld [vmem:[%s1447_s4 + $0x8] sm:$0xff]  ;;  %v1331_v22 = vshrl.u32 %v386_v21, 7  ;;  %vm894_vm1 = vcmp.lt.s32.totalorder %v386_v21, 256  ;;  %s906_s15 = ssub.s32 (%p1265_p5), 3, %s1326_s28 }
  0x19   : > { %v462_v12 = vld [vmem:[%s1445_s2] sm:$0xff]  ;;  %v647_v13 = vld [vmem:[%s1449_s6 + $0x18] sm:$0xff]  ;;  %v508_v14 = vld [vmem:[%s1447_s4 + $0x10] sm:$0xff]  ;;  %607 = vmatprep.mubr.f32.mxu0 %v1171_v20  ;;  %744 = vmatprep.mubr.f32.mxu1 %v1171_v20  ;;  %s982_s30 = sshll.u32 %s347_s29, 1  ;;  %s980_s29 = sshll.u32 %s338_s27, 1 }
  0x1a   : > { %v645_v15 = vld [vmem:[%s1449_s6 + $0x8] sm:$0xff]  ;;  %v506_v16 = vld [vmem:[%s1447_s4] sm:$0xff]  ;;  %v646_v18 = vld [vmem:[%s1449_s6 + $0x10] sm:$0xff]  ;;  %s349_s17 = scalar_lea.vmem %s1443_s0, %s982_s30  ;;  %v430_v23 = vsub.s32 1, %v1331_v22  ;;  %v434_v24 = vsub.s32 3, %v1331_v22  ;;  %v1339_v25 = vsub.s32 0, %v1331_v22 }
  0x1b   : > { %v778_v17 = vld [vmem:[#allocation2] sm:$0x1]  ;;  %v392_v26 = vsub.s32 2, %v1331_v22  ;;  %s340_s30 = scalar_lea.vmem [#allocation3], %s980_s29  ;;  %p907_p11 = scmp.lt.s32.totalorder (%p1265_p5), %s906_s15, 2 }
  0x1c   : > { %1046 = vset.pattern.permute.xlu1 %v1169_v3  ;;  %417 = vperm.xlu0 %1044, %v362_v5   ;;  %v644_v19 = vld [vmem:[%s1449_s6] sm:$0xff] }
  0x1d   : > { %421 = vperm.xlu1 %1046, %v363_v2   ;;  %v360_v29 = vld [vmem:[%s349_s17] sm:$0xf] }
  0x1e   : > { %v431_v30 = vrot.slane %v360_v29, %v430_v23  ;;  %v435_v31 = vrot.slane %v360_v29, %v434_v24  ;;  %v389_v32 = vrot.slane %v360_v29, %v1339_v25  ;;  %v393_v33 = vrot.slane %v360_v29, %v392_v26  ;;  %v503_v29 = vld [vmem:[%s1446_s3 + $0x8] sm:$0xff] }
  0x20   : > { %1048 = vset.pattern.permute.xlu0 %v1170_v4  ;;  %v441_v36 = vrot.slane %v431_v30, %v430_v23  ;;  %v445_v37 = vrot.slane %v435_v31, %v430_v23  ;;  %v399_v38 = vrot.slane %v389_v32, %v1339_v25  ;;  %v403_v39 = vrot.slane %v393_v33, %v1339_v25  ;;  %v504_v30 = vld [vmem:[%s1446_s3 + $0x10] sm:$0xff]  ;;  %v505_v31 = vld [vmem:[%s1446_s3 + $0x18] sm:$0xff] }
  0x21   : > { %1047 = vset.pattern.permute.xlu1 %v1170_v4  ;;  %382 = vperm.xlu0 %1048, %v364_v1  }
  0x22   : > { %372 = vperm.xlu1 %1047, %v362_v5  }
  0x25   : > { %367 = vperm.xlu0 %1048, %v361_v6  }
  0x26   : > { %483 = vperm.xlu1 %1047, %v465_v7  }
  0x29   : > { %473 = vperm.xlu0 %1048, %v463_v8  }
  0x2a   : > { %1049 = vset.pattern.permute.xlu1 %v1169_v3 }
  0x2b   : > { %413 = vperm.xlu1 %1049, %v361_v6  }
  0x2d   : > { %527 = vperm.xlu0 %1048, %v509_v9  }
  0x2f   : > { %1050 = vset.pattern.permute.xlu1 %v1170_v4 }
  0x30   : > { %478 = vperm.xlu1 %1050, %v464_v10  }
  0x31   : > { %517 = vperm.xlu0 %1048, %v507_v11  }
  0x34   : > { %468 = vperm.xlu1 %1050, %v462_v12  }
  0x35   : > { %665 = vperm.xlu0 %1048, %v647_v13  }
  0x38   : > { %522 = vperm.xlu1 %1050, %v508_v14  }
  0x39   : > { %655 = vperm.xlu0 %1048, %v645_v15  }
  0x3c   : > { %512 = vperm.xlu1 %1050, %v506_v16  }
  0x3d   : > { %781 = vperm.xlu0 %1048, %v778_v17  }
  0x40   : > { %660 = vperm.xlu1 %1050, %v646_v18  }
  0x44   : > { %650 = vperm.xlu1 %1050, %v644_v19  }
  0x93   : > { %v378_v27 = vpop.permute.xlu1 %377  ;;  %v426_v28 = vpop.permute.xlu0 %425 }
  0x94   : > { %v452_v40 = vmul.f32 %v441_v36, %v426_v28  ;;  %v453_v41 = vmul.f32 %v445_v37, %v426_v28  ;;  %v408_v57 = vmul.f32 %v399_v38, %v378_v27  ;;  %v409_v58 = vmul.f32 %v403_v39, %v378_v27  ;;  %v502_v28 = vld [vmem:[%s1446_s3] sm:$0xff] }
  0x97   : > { %v418_v34 = vpop.permute.xlu0 %417 }
  0x98   : > { %v422_v35 = vpop.permute.xlu1 %421  ;;  %v448_v52 = vmul.f32 %v441_v36, %v418_v34  ;;  %v449_v59 = vmul.f32 %v445_v37, %v418_v34 }
  0x99   : > { %v450_v53 = vmul.f32 %v441_v36, %v422_v35  ;;  %v451_v54 = vmul.f32 %v445_v37, %v422_v35 }
  0x9b   : > { %v458_v63 = vadd.f32 %v450_v53, %v408_v57  ;;  %v459_v0 = vadd.f32 %v451_v54, %v409_v58 }
  0x9c   : > { %v383_v42 = vpop.permute.xlu0 %382 }
  0x9d   : > { %v410_v43 = vmul.f32 %v399_v38, %v383_v42  ;;  %v411_v44 = vmul.f32 %v403_v39, %v383_v42  ;;  %v373_v45 = vpop.permute.xlu1 %372 }
  0x9e   : > { %v406_v55 = vmul.f32 %v399_v38, %v373_v45  ;;  %v407_v60 = vmul.f32 %v403_v39, %v373_v45 }
  0x9f   : > { %v460_v46 = vadd.f32 %v452_v40, %v410_v43  ;;  %v461_v47 = vadd.f32 %v453_v41, %v411_v44 }
  0xa0   : > { %v368_v51 = vpop.permute.xlu0 %367  ;;  %v456_v62 = vadd.f32 %v448_v52, %v406_v55  ;;  %v457_v5 = vadd.f32 %v449_v59, %v407_v60  ;;  %v640_v59 = vld [vmem:[%s1448_s5] sm:$0xff] }
  0xa1   : > { %v484_v48 = vpop.permute.xlu1 %483  ;;  %v404_v1 = vmul.f32 %v399_v38, %v368_v51  ;;  %v405_v2 = vmul.f32 %v403_v39, %v368_v51 }
  0xa2   : > { %v492_v49 = vadd.f32 %v484_v48, %v460_v46  ;;  %v493_v50 = vadd.f32 %v484_v48, %v461_v47 }
  0xa4   : > { %1051 = vtanh.f32 %v492_v49  ;;  %v474_v61 = vpop.permute.xlu0 %473 }
  0xa5   : > { %1053 = vtanh.f32 %v493_v50  ;;  %v488_v7 = vadd.f32 %v474_v61, %v456_v62  ;;  %v489_v10 = vadd.f32 %v474_v61, %v457_v5  ;;  %v641_v61 = vld [vmem:[%s1448_s5 + $0x8] sm:$0xff]  ;;  %v642_v62 = vld [vmem:[%s1448_s5 + $0x10] sm:$0xff] }
  0xa6   : > { %v414_v56 = vpop.permute.xlu1 %413 }
  0xa7   : > { %v446_v3 = vmul.f32 %v441_v36, %v414_v56  ;;  %v447_v4 = vmul.f32 %v445_v37, %v414_v56 }
  0xa8   : > { %v528_v37 = vpop.permute.xlu0 %527 }
  0xa9   : > { %v454_v11 = vadd.f32 %v446_v3, %v404_v1  ;;  %v455_v12 = vadd.f32 %v447_v4, %v405_v2 }
  0xab   : > { %v479_v6 = vpop.permute.xlu1 %478 }
  0xac   : > { %v490_v8 = vadd.f32 %v479_v6, %v458_v63  ;;  %v491_v9 = vadd.f32 %v479_v6, %v459_v0  ;;  %v518_v45 = vpop.permute.xlu0 %517  ;;  %v643_v63 = vld [vmem:[%s1448_s5 + $0x18] sm:$0xff] }
  0xae   : > { %1055 = vtanh.f32 %v490_v8 }
  0xaf   : > { %1057 = vtanh.f32 %v491_v9  ;;  %v469_v13 = vpop.permute.xlu1 %468 }
  0xb0   : > { %1059 = vtanh.f32 %v488_v7  ;;  %v486_v14 = vadd.f32 %v469_v13, %v454_v11  ;;  %v487_v15 = vadd.f32 %v469_v13, %v455_v12  ;;  %v666_v5 = vpop.permute.xlu0 %665 }
  0xb1   : > { %v1052_v16 = vpop.eup %1051  ;;  %1061 = vtanh.f32 %v489_v10 }
  0xb2   : > { %v1054_v17 = vpop.eup %1053  ;;  %1063 = vtanh.f32 %v486_v14 }
  0xb3   : > { %1065 = vtanh.f32 %v487_v15  ;;  %567 = vmatprep.subr.mxu0 %v1054_v17  ;;  %v523_v39 = vpop.permute.xlu1 %522 }
  0xb4   : > { %568 = vmatpush1.msra.mxu0 %v1052_v16 }
  0xb7   : > { %v513_v48 = vpop.permute.xlu1 %512 }
  0xbb   : > { %v1056_v18 = vpop.eup %1055  ;;  %v661_v7 = vpop.permute.xlu1 %660 }
  0xbc   : > { %v1058_v19 = vpop.eup %1057 }
  0xbd   : > { %v1060_v23 = vpop.eup %1059  ;;  %569 = vmatprep.subr.mxu0 %v1058_v19 }
  0xbe   : > { %v1062_v24 = vpop.eup %1061  ;;  %570 = vmatpush1.msra.mxu0 %v1056_v18 }
  0xbf   : > { %v1064_v26 = vpop.eup %1063  ;;  %571 = vmatprep.subr.mxu0 %v1062_v24  ;;  %v651_v15 = vpop.permute.xlu1 %650 }
  0xc0   : > { %v1066_v27 = vpop.eup %1065  ;;  %572 = vmatpush1.msra.mxu0 %v1060_v23 }
  0xc1   : > { %573 = vmatprep.subr.mxu0 %v1066_v27 }
  0xc2   : > { %574 = vmatpush1.msra.mxu0 %v1064_v26 }
  0xc3   : > { %983 = vmatmul.mubr.msk.f32.vlgmr.msra.gmra.mxu0 %vm530_vm0, %v502_v28 }
  0xc4   : > { %613 = vmatprep.mubr.f32.mxu0 %v1171_v20 }
  0xc7   : > { %984 = vmatmul.mubr.msk.f32.gmra.mxu0 %vm530_vm0, %v503_v29 }
  0xc8   : > { %619 = vmatprep.mubr.f32.mxu0 %v1171_v20 }
  0xcb   : > { %985 = vmatmul.mubr.msk.f32.gmra.mxu0 %vm530_vm0, %v504_v30  ;;  %v777_v30 = vld [vmem:[%s1450_s7] sm:$0x1] }
  0xcc   : > { %625 = vmatprep.mubr.f32.mxu0 %v1171_v20 }
  0xcf   : > { %986 = vmatmul.mubr.msk.f32.gmra.mxu0 %vm530_vm0, %v505_v31 }
  0xd0   : > { %855 = vmatprep.mubr.f32.mxu0 %v1171_v20 }
 0x183   : > { %v609_v32 = vpop.f32.mrf.mxu0 }
 0x184   : > { %v610_v51 = vadd.f32 %v609_v32, %v513_v48 }
 0x185   : > { %v611_v33 = vpop.f32.mrf.mxu0 }
 0x186   : > { %v612_v50 = vadd.f32 %v611_v33, %v513_v48 }
 0x187   : > { %v615_v34 = vpop.f32.mrf.mxu0 }
 0x188   : > { %v616_v49 = vadd.f32 %v615_v34, %v518_v45 }
 0x189   : > { %v617_v35 = vpop.f32.mrf.mxu0 }
 0x18a   : > { %v618_v47 = vadd.f32 %v617_v35, %v518_v45 }
 0x18b   : > { %v621_v36 = vpop.f32.mrf.mxu0 }
 0x18c   : > { %v622_v46 = vadd.f32 %v621_v36, %v523_v39 }
 0x18d   : > { %v623_v38 = vpop.f32.mrf.mxu0 }
 0x18e   : > { %v624_v43 = vadd.f32 %v623_v38, %v523_v39 }
 0x18f   : > { %v627_v40 = vpop.f32.mrf.mxu0 }
 0x190   : > { %v628_v41 = vadd.f32 %v627_v40, %v528_v37 }
 0x191   : > { %v629_v42 = vpop.f32.mrf.mxu0 }
 0x192   : > { %v630_v44 = vadd.f32 %v629_v42, %v528_v37 }
 0x194   : > { %1067 = vtanh.f32 %v630_v44  ;;  %v1172_v44 = vmov 1966171168  }
 0x195   : > { %1069 = vtanh.f32 %v628_v41  ;;  %v878_v45 = vunpack.c.l.s4 %v1172_v44 }
 0x196   : > { %1071 = vtanh.f32 %v624_v43 }
 0x197   : > { %1073 = vtanh.f32 %v622_v46  ;;  %v879_v46 = vunpack.c.0.s8 %v878_v45 }
 0x198   : > { %1075 = vtanh.f32 %v618_v47 }
 0x199   : > { %1077 = vtanh.f32 %v616_v49  ;;  %v882_v47 = vsub.s32 %v879_v46, %v1331_v22 }
 0x19a   : > { %1079 = vtanh.f32 %v612_v50 }
 0x19b   : > { %1081 = vtanh.f32 %v610_v51 }
 0x1a1   : > { %v1068_v52 = vpop.eup %1067 }
 0x1a2   : > { %v1070_v53 = vpop.eup %1069  ;;  %704 = vmatprep.subr.mxu1 %v1068_v52 }
 0x1a3   : > { %v1072_v54 = vpop.eup %1071  ;;  %705 = vmatpush1.msra.mxu1 %v1070_v53 }
 0x1a4   : > { %v1074_v55 = vpop.eup %1073  ;;  %706 = vmatprep.subr.mxu1 %v1072_v54 }
 0x1a5   : > { %v1076_v56 = vpop.eup %1075  ;;  %707 = vmatpush1.msra.mxu1 %v1074_v55 }
 0x1a6   : > { %v1078_v57 = vpop.eup %1077  ;;  %708 = vmatprep.subr.mxu1 %v1076_v56 }
 0x1a7   : > { %v1080_v58 = vpop.eup %1079  ;;  %709 = vmatpush1.msra.mxu1 %v1078_v57 }
 0x1a8   : > { %v1082_v60 = vpop.eup %1081  ;;  %710 = vmatprep.subr.mxu1 %v1080_v58 }
 0x1a9   : > { %711 = vmatpush1.msra.mxu1 %v1082_v60 }
 0x1aa   : > { %987 = vmatmul.mubr.msk.f32.vlgmr.msra.gmra.mxu1 %vm530_vm0, %v640_v59 }
 0x1ab   : > { %750 = vmatprep.mubr.f32.mxu1 %v1171_v20 }
 0x1ae   : > { %988 = vmatmul.mubr.msk.f32.gmra.mxu1 %vm530_vm0, %v641_v61 }
 0x1af   : > { %756 = vmatprep.mubr.f32.mxu1 %v1171_v20 }
 0x1b2   : > { %989 = vmatmul.mubr.msk.f32.gmra.mxu1 %vm530_vm0, %v642_v62 }
 0x1b3   : > { %762 = vmatprep.mubr.f32.mxu1 %v1171_v20  ;;  %v656_v20 = vpop.permute.xlu0 %655 }
 0x1b6   : > { %990 = vmatmul.mubr.msk.f32.gmra.mxu1 %vm530_vm0, %v643_v63 }
 0x1b7   : > { %v782_v32 = vpop.permute.xlu0 %781 }
 0x1b8   : > { %v787_v33 = vrot.slane %v782_v32, %v1339_v25 }
 0x26a   : > { %v746_v0 = vpop.f32.mrf.mxu1 }
 0x26b   : > { %v747_v18 = vadd.f32 %v746_v0, %v651_v15 }
 0x26c   : > { %v748_v1 = vpop.f32.mrf.mxu1 }
 0x26d   : > { %v749_v17 = vadd.f32 %v748_v1, %v651_v15 }
 0x26e   : > { %v752_v2 = vpop.f32.mrf.mxu1 }
 0x26f   : > { %v753_v16 = vadd.f32 %v752_v2, %v656_v20 }
 0x270   : > { %v754_v3 = vpop.f32.mrf.mxu1 }
 0x271   : > { %v755_v14 = vadd.f32 %v754_v3, %v656_v20 }
 0x272   : > { %v758_v4 = vpop.f32.mrf.mxu1 }
 0x273   : > { %v759_v13 = vadd.f32 %v758_v4, %v661_v7 }
 0x274   : > { %v760_v6 = vpop.f32.mrf.mxu1 }
 0x275   : > { %v761_v11 = vadd.f32 %v760_v6, %v661_v7 }
 0x276   : > { %v764_v8 = vpop.f32.mrf.mxu1 }
 0x277   : > { %v765_v9 = vadd.f32 %v764_v8, %v666_v5 }
 0x278   : > { %v766_v10 = vpop.f32.mrf.mxu1 }
 0x279   : > { %v767_v12 = vadd.f32 %v766_v10, %v666_v5 }
 0x27b   : > { %1083 = vtanh.f32 %v767_v12 }
 0x27c   : > { %1085 = vtanh.f32 %v765_v9 }
 0x27d   : > { %1087 = vtanh.f32 %v761_v11 }
 0x27e   : > { %1089 = vtanh.f32 %v759_v13 }
 0x27f   : > { %1091 = vtanh.f32 %v755_v14 }
 0x280   : > { %1093 = vtanh.f32 %v753_v16 }
 0x281   : > { %1095 = vtanh.f32 %v749_v17 }
 0x282   : > { %1097 = vtanh.f32 %v747_v18 }
 0x288   : > { %v1084_v19 = vpop.eup %1083 }
 0x289   : > { %v1086_v23 = vpop.eup %1085  ;;  %815 = vmatprep.subr.mxu0 %v1084_v19 }
 0x28a   : > { %v1088_v24 = vpop.eup %1087  ;;  %816 = vmatpush1.msra.mxu0 %v1086_v23 }
 0x28b   : > { %v1090_v26 = vpop.eup %1089  ;;  %817 = vmatprep.subr.mxu0 %v1088_v24 }
 0x28c   : > { %v1092_v27 = vpop.eup %1091  ;;  %818 = vmatpush1.msra.mxu0 %v1090_v26 }
 0x28d   : > { %v1094_v28 = vpop.eup %1093  ;;  %819 = vmatprep.subr.mxu0 %v1092_v27 }
 0x28e   : > { %v1096_v29 = vpop.eup %1095  ;;  %820 = vmatpush1.msra.mxu0 %v1094_v28 }
 0x28f   : > { %v1098_v31 = vpop.eup %1097  ;;  %821 = vmatprep.subr.mxu0 %v1096_v29 }
 0x290   : > { %822 = vmatpush1.msra.mxu0 %v1098_v31 }
 0x291   : > { %991 = vmatmul.mubr.msk.f32.vlgmr.msra.gmra.mxu0 %vm530_vm0, %v777_v30 }
 0x351   : > { %v857_v34 = vpop.f32.mrf.mxu0 }
 0x352   : > { %v858_v35 = vadd.f32 %v857_v34, %v787_v33 }
 0x353   : > { %v859_v36 = vpop.f32.mrf.mxu0 }
 0x354   : > { %v992_v37 = vmul.f32 -1.442695, %v858_v35  ;;  %v860_v38 = vadd.f32 %v859_v36, %v787_v33 }
 0x356   : > { %1099 = vpow2.f32 %v992_v37  ;;  %v993_v39 = vmul.f32 -1.442695, %v860_v38 }
 0x358   : > { %1101 = vpow2.f32 %v993_v39 }
 0x363   : > { %v1100_v40 = vpop.eup %1099 }
 0x364   : > { %v868_v41 = vadd.f32 1.0, %v1100_v40 }
 0x365   : > { %v1102_v42 = vpop.eup %1101 }
 0x366   : > { %v869_v43 = vadd.f32 1.0, %v1102_v42  ;;  %1103 = vrcp.f32 %v868_v41 }
 0x368   : > { %1105 = vrcp.f32 %v869_v43 }
 0x373   : > { %v1104_v25 = vpop.eup %1103 }
 0x375   : > { %v1106_v48 = vpop.eup %1105 }
 0x376   : > { %v876_v49 = vcombine.low %v1104_v25, %v1106_v48 }
 0x378   : > { %v883_v50 = vrot.slane %v876_v49, %v882_v47  ;;  %904 = sbr.rel (!%p1265_p5) target bundleno = 919 (0x397), region = 60 }
 0x37a   : > { %v890_v51 = vrot.slane %v883_v50, %v882_v47 }
 0x37c   : > { %896 = vst.msk [vmem:[%s340_s30] sm:$0x3] %vm894_vm1, %v890_v51 }
 0x37d   : > { %s1460_s15 = smov (!%p907_p11, %s906_s15), 2 }
 0x37e   : > { %s1401_s17 = sshll.u32 %s1460_s15, 4 }
 0x37f   : > { %s911_s18 = ssub.s32 32, %s1401_s17 }
 0x380   : > { %912 = vsyncadd %s1396_s10, %s911_s18  ;;  %p997_p12 = scmp.ne.s32.totalorder %s1401_s17, 0  ;;  %s1001_s22 = sshll.u32 %s1248_s8, 5 }
 0x381   : > { %s915_s20 = scalar_lea.hbm %s1452_s9, %s1001_s22  ;;  %s917_s25 = sshll.u32 %s340_s30, 4  ;;  %s918_s25 = int_to_ptr.vmem [resolvable:$true] %s917_s25 }
 0x382   : > { %s1107_s28 = scalar_lea.vmem %s918_s25, %s1401_s17  ;;  %s1173_s26 = smov [#allocation3]  }
 0x383   : > { %p1108_p13 = scmp.ne.s32.totalorder %s918_s25, %s1107_s28  ;;  %s1111_s27 = sshll.u32 %s1173_s26, 4  ;;  %s1112_s27 = int_to_ptr.vmem [resolvable:$false] %s1111_s27 }
 0x384   : > { %s1113_s29 = scalar_lea.vmem %s1112_s27, 64  ;;  %p1114_p2 = scmp.lt.s32.totalorder %s918_s25, %s1112_s27 }
 0x385   : > { %p1109_p0 = pnand %p1108_p13, %p997_p12  ;;  %p1115_p3 = scmp.lt.s32.totalorder %s1113_s29, %s1107_s28 }
 0x387   : > { %p1110_p1 = pneg %p1109_p0  ;;  %p1116_p4 = por %p1115_p3, %p1114_p2 }
 0x389   : > { %p1117_p5 = pnand %p1116_p4, %p1110_p1 }
 0x38b   : > { %1120 = shalt.err (!%p1117_p5)
}
 0x38c   : > { %s1121_s8 = scalar_lea.hbm %s915_s20, %s1401_s17  ;;  %s1125_s18 = scalar_lea.hbm %s1452_s9, 48 }
 0x38d   : > { %p1122_p7 = scmp.ne.s32.totalorder %s915_s20, %s1121_s8  ;;  %p1126_p10 = scmp.lt.s32.totalorder %s915_s20, %s1452_s9 }
 0x38e   : > { %p1127_p11 = scmp.lt.s32.totalorder %s1125_s18, %s1121_s8 }
 0x38f   : > { %p1123_p8 = pnand %p1122_p7, %p997_p12 }
 0x390   : > { %p1128_p13 = por %p1127_p11, %p1126_p10 }
 0x391   : > { %p1124_p9 = pneg %p1123_p8 }
 0x393   : > { %p1129_p0 = pnand %p1128_p13, %p1124_p9 }
 0x395   : > { %1132 = shalt.err (!%p1129_p0)
}
 0x396   : > { %920 = dma.vmem_to_hbm [thread:$0]  (%p997_p12), %s918_s25, %s1401_s17, %s915_s20, %s1396_s10  }
 0x397 PF: > { %p1007_p1 = scmp.ge.s32.totalorder %s1167_s14, 2  ;;  %s929_s24 = sand.u32 1, %s1155_s11  }
 0x398   : > { %s930_s28 = scalar_lea.sflag [#allocation4], %s929_s24 }
 0x399   : > { %p1004_p2 = pnand %p1007_p1, %p1269_p6 }
 0x39b   : > { %p1005_p3 = pneg %p1004_p2 }
 0x39d   : > { %1150 = dma.done.wait (%p1005_p3), %s930_s28, 32  }
 0x39e   : > { %1152 = vsyncadd (%p1005_p3), %s930_s28, 4294967264  ;;  %p21_p4 = scmp.ge.s32.totalorder %s1252_s16, 4   ;;  %s1455_s11 = smov %s1159_s12 }
 0x39f   : > { %s1456_s12 = smov %s1163_s13  ;;  %s1457_s13 = smov %s1263_s19 }
 0x3a0   : > { %s1458_s14 = smov %s1252_s16  ;;  %23 = sbr.rel (!%p21_p4) target bundleno = 6 (0x6), region = 91 }
 0x3a5   :  { %935 = vsyncpa [#allocation4], 1 }
 0x3a6   :  { %937 = vsyncpa [#allocation4 + $0x1], 1 }

</bundles_post_ra>
